<compile_context>
chip_gen: v7x
topology: tpu7x:2x2x1
jax: 0.10.0
libtpu: 0.0.40
codegen_flags: <defaults>
</compile_context>

<pallas_src>
import jax
import jax.numpy as jnp
from jax.experimental import pallas as pl
from jax.experimental.pallas import tpu as pltpu


# ----------------------------- Pallas kernel --------------------------------
def _conv_layer_kernel(a_ref, xw1b_ref, h0_ref, w2_ref, b2_ref, o_ref, acc_ref):
    k = pl.program_id(1)

    @pl.when(k == 0)
    def _():
        acc_ref[...] = jnp.zeros_like(acc_ref)

    # int8 0/1 adjacency tile -> bf16 on the VPU (exact), f32 MXU accumulation.
    a_bf = a_ref[...].astype(jnp.bfloat16)
    acc_ref[...] += jnp.dot(a_bf, xw1b_ref[...],
                            preferred_element_type=jnp.float32)

    @pl.when(k == pl.num_programs(1) - 1)
    def _():
        # lin1 local half + bias precomputed into H0 (f32); ReLU on the VPU.
        h = jnp.maximum(acc_ref[...] + h0_ref[...], 0.0)
        # BatchNorm(eval) folded into W2'/b2' on host; Dropout(eval) = identity.
        out = jnp.dot(h.astype(w2_ref.dtype), w2_ref[...],
                      preferred_element_type=jnp.float32) + b2_ref[...]
        o_ref[...] = out.astype(o_ref.dtype)


def conv_layer_forward(x, a_khop, params, *, tile_rows=None, tile_k=None,
                       vmem_limit_bytes=None):
    """x: [N, C_in] node features, a_khop: [N, N] 0/1 k-hop adjacency."""
    N, c_in = x.shape
    hidden = params["w1"].shape[1]
    c_out = params["w2"].shape[1]

    if tile_rows is None:
        # >=2 row blocks when possible so the "parallel" axis can shard across
        # both v7x TensorCores; int8 A wants row multiples of 32.
        if N >= 64 and (N // 2) % 32 == 0:
            tile_rows = min(256, N // 2)
        else:
            tile_rows = N
    if tile_k is None:
        tile_k = min(N, 512)
    assert N % tile_rows == 0 and N % tile_k == 0
    assert hidden % 128 == 0
    assert tile_k % 128 == 0 or tile_k == N

    # ---- host-side folding / reassociation (plain JAX, f32) ----
    eps = 1e-5
    inv_std = 1.0 / jnp.sqrt(params["bn_var"] + eps)
    bn_scale = params["bn_gamma"] * inv_std                       # (hidden,)
    bn_shift = params["bn_beta"] - params["bn_mean"] * bn_scale   # (hidden,)

    # Fold eval BN into lin2:  lin2(bn(h)) = h @ (scale*W2) + (shift @ W2 + b2)
    w2_fold = bn_scale[:, None] * params["w2"]                    # (hidden, c_out)
    b2_fold = bn_shift @ params["w2"] + params["b2"]              # (c_out,)

    # Lane-dense (padded) output channels -> unmasked stores; sliced below.
    c_pad = ((c_out + 127) // 128) * 128
    w2_p = jnp.zeros((hidden, c_pad), jnp.float32).at[:, :c_out].set(w2_fold)
    b2_p = jnp.zeros((1, c_pad), jnp.float32).at[0, :c_out].set(b2_fold)

    # Reassociate neighborhood matmul: (A @ x) @ W1b == A @ (x @ W1b)
    w1a = params["w1"][:c_in]                                     # local half
    w1b = params["w1"][c_in:]                                     # neighborhood half
    xw1b = x @ w1b                                                # (N, hidden)
    h0 = x @ w1a + params["b1"][None, :]                          # (N, hidden)

    # A is exactly 0/1 -> int8 in HBM (half the bf16 bytes), upcast in-kernel.
    a_i8 = a_khop.astype(jnp.int8)
    xw1b_bf = xw1b.astype(jnp.bfloat16)
    w2_bf = w2_p.astype(jnp.bfloat16)

    grid = (N // tile_rows, N // tile_k)

    cost = pl.CostEstimate(
        flops=2 * N * N * hidden + 2 * N * hidden * c_pad,
        transcendentals=0,
        bytes_accessed=(N * N                         # A (int8)
                        + N * hidden * 2              # XW1b (bf16)
                        + N * hidden * 4              # H0 (f32)
                        + hidden * c_pad * 2          # W2' (bf16)
                        + c_pad * 4                   # b2'
                        + N * c_pad * 4))             # out

    out_padded = pl.pallas_call(
        _conv_layer_kernel,
        out_shape=jax.ShapeDtypeStruct((N, c_pad), jnp.float32),
        grid_spec=pltpu.PrefetchScalarGridSpec(
            num_scalar_prefetch=0,
            grid=grid,
            in_specs=[
                pl.BlockSpec((tile_rows, tile_k), lambda i, k: (i, k)),   # A (int8)
                pl.BlockSpec((tile_k, hidden), lambda i, k: (k, 0)),      # XW1b (bf16)
                pl.BlockSpec((tile_rows, hidden), lambda i, k: (i, 0)),   # H0 (f32)
                pl.BlockSpec((hidden, c_pad), lambda i, k: (0, 0)),       # W2' (bf16)
                pl.BlockSpec((1, c_pad), lambda i, k: (0, 0)),            # b2' (f32)
            ],
            out_specs=pl.BlockSpec((tile_rows, c_pad), lambda i, k: (i, 0)),
            scratch_shapes=[pltpu.VMEM((tile_rows, hidden), jnp.float32)],
        ),
        compiler_params=pltpu.CompilerParams(
            dimension_semantics=("parallel", "arbitrary"),
            vmem_limit_bytes=vmem_limit_bytes),
        cost_estimate=cost,
    )(a_i8, xw1b_bf, h0, w2_bf, b2_p)

    return out_padded[:, :c_out]


# ------------------------------ plain-JAX glue -------------------------------
def khop_adjacency(adj_bool, nhops):
    """Boolean reachability within `nhops` hops (excluding self), as float32."""
    n = adj_bool.shape[0]
    reach = jnp.zeros_like(adj_bool)
    cur = jnp.eye(n, dtype=bool)
    for _ in range(nhops):
        cur = (cur.astype(jnp.float32) @ adj_bool.astype(jnp.float32)) > 0
        reach = reach | cur
    reach = reach & ~jnp.eye(n, dtype=bool)
    return reach.astype(jnp.float32)


def init_params(key, c_in, c_out, hidden=128):
    ks = jax.random.split(key, 8)
    s1 = 1.0 / jnp.sqrt(2.0 * c_in)
    s2 = 1.0 / jnp.sqrt(float(hidden))
    return {
        "w1": jax.random.uniform(ks[0], (2 * c_in, hidden), jnp.float32, -s1, s1),
        "b1": jax.random.uniform(ks[1], (hidden,), jnp.float32, -s1, s1),
        "w2": jax.random.uniform(ks[2], (hidden, c_out), jnp.float32, -s2, s2),
        "b2": jax.random.uniform(ks[3], (c_out,), jnp.float32, -s2, s2),
        "bn_gamma": 1.0 + 0.1 * jax.random.normal(ks[4], (hidden,), jnp.float32),
        "bn_beta": 0.1 * jax.random.normal(ks[5], (hidden,), jnp.float32),
        "bn_mean": 0.05 * jax.random.normal(ks[6], (hidden,), jnp.float32),
        "bn_var": jnp.abs(1.0 + 0.1 * jax.random.normal(ks[7], (hidden,), jnp.float32)),
    }


def reference_forward(x, a_khop, params):
    """Pure-f32 semantic reference (matches the PyTorch module in eval mode)."""
    eps = 1e-5
    x1 = jnp.concatenate([x, a_khop @ x], axis=-1)
    h = jnp.maximum(x1 @ params["w1"] + params["b1"], 0.0)
    h = (h - params["bn_mean"]) / jnp.sqrt(params["bn_var"] + eps) \
        * params["bn_gamma"] + params["bn_beta"]
    return h @ params["w2"] + params["b2"]


def reference_forward_matched(x, a_khop, params):
    """Reference with the same reassociation / BN-fold / bf16 casts as the kernel."""
    eps = 1e-5
    c_in = x.shape[1]
    inv_std = 1.0 / jnp.sqrt(params["bn_var"] + eps)
    bn_scale = params["bn_gamma"] * inv_std
    bn_shift = params["bn_beta"] - params["bn_mean"] * bn_scale
    w2_fold = bn_scale[:, None] * params["w2"]
    b2_fold = bn_shift @ params["w2"] + params["b2"]
    w1a, w1b = params["w1"][:c_in], params["w1"][c_in:]
    xw1b = (x @ w1b).astype(jnp.bfloat16)
    h0 = x @ w1a + params["b1"][None, :]
    # A is 0/1 so int8->bf16 is exact; same operand dtype as the kernel.
    nbr = jnp.dot(a_khop.astype(jnp.int8).astype(jnp.bfloat16), xw1b,
                  preferred_element_type=jnp.float32)
    h = jnp.maximum(nbr + h0, 0.0)
    return (jnp.dot(h.astype(jnp.bfloat16), w2_fold.astype(jnp.bfloat16),
                    preferred_element_type=jnp.float32) + b2_fold[None, :])


# ---------------------------------- main --------------------------------------
if __name__ == "__main__":
    key = jax.random.PRNGKey(0)
    k_graph, k_feat, k_param = jax.random.split(key, 3)

    N = 128            # number of nodes (atoms), one per reference domain
    c_in = 4           # channels_in
    c_out = 8          # channels_out
    nhops = 2

    # deterministic random undirected graph
    upper = jax.random.bernoulli(k_graph, 0.08, (N, N))
    adj = jnp.triu(upper, k=1)
    adj = adj | adj.T
    a_khop = khop_adjacency(adj, nhops)                     # [N, N] float32 (0/1)

    x = jax.random.normal(k_feat, (N, c_in), jnp.float32)   # [N, C_in]
    params = init_params(k_param, c_in, c_out)

    out = conv_layer_forward(x, a_khop, params)             # grid=(2, 1) at this size
    out = jax.block_until_ready(out)
    assert out.shape == (N, c_out)

    # 1) tight check: kernel computes exactly the intended (reassociated, bf16) math
    ref_matched = reference_forward_matched(x, a_khop, params)
    assert jnp.allclose(out, ref_matched, atol=2e-3, rtol=2e-3), \
        "kernel math mismatch vs precision-matched reference"

    # 2) loose check: bf16 drift vs the pure-f32 module semantics stays bounded
    ref_f32 = reference_forward(x, a_khop, params)
    assert jnp.allclose(out, ref_f32, atol=1.5e-1, rtol=2e-2), \
        "bf16 drift vs f32 reference too large"

    print("KERNEL_OK")
</pallas_src>

<mosaic_0001>
module attributes {stable_mosaic.version = 11 : i64} {
  func.func @_conv_layer_kernel(%arg0: i32, %arg1: i32, %arg2: memref<64x128xi8, #tpu.memory_space<vmem>>, %arg3: memref<128x128xbf16, #tpu.memory_space<vmem>>, %arg4: memref<64x128xf32, #tpu.memory_space<vmem>>, %arg5: memref<128x128xbf16, #tpu.memory_space<vmem>>, %arg6: memref<1x128xf32, #tpu.memory_space<vmem>>, %arg7: memref<64x128xf32, #tpu.memory_space<vmem>>, %arg8: memref<64x128xf32, #tpu.memory_space<vmem>>) attributes {dimension_semantics = [#tpu.dimension_semantics<parallel>, #tpu.dimension_semantics<arbitrary>], iteration_bounds = array<i64: 2, 1>, scalar_prefetch = 0 : i64, scratch_operands = 1 : i64, tpu.core_type = #tpu.core_type<tc>, window_params = [{transform_indices = @transform_0, window_bounds = array<i64: 64, 128>}, {transform_indices = @transform_1, window_bounds = array<i64: 128, 128>}, {transform_indices = @transform_2, window_bounds = array<i64: 64, 128>}, {pipeline_mode = #tpu.pipeline_mode<synchronous>, transform_indices = @transform_3, window_bounds = array<i64: 128, 128>}, {pipeline_mode = #tpu.pipeline_mode<synchronous>, transform_indices = @transform_4, window_bounds = array<i64: 1, 128>}, {transform_indices = @transform_5, window_bounds = array<i64: 64, 128>}]} {
    %c0_i32 = arith.constant 0 : i32
    %0 = arith.cmpi eq, %arg1, %c0_i32 : i32
    %1 = arith.extui %0 : i1 to i32
    %c0_i32_0 = arith.constant 0 : i32
    %2 = arith.cmpi ne, %1, %c0_i32_0 : i32
    scf.if %2 {
      %cst_10 = arith.constant 0.000000e+00 : f32
      %13 = vector.broadcast %cst_10 : f32 to vector<64x128xf32>
      %c0_11 = arith.constant 0 : index
      %c0_12 = arith.constant 0 : index
      %14 = vector.load %arg8[%c0_11, %c0_12] : memref<64x128xf32, #tpu.memory_space<vmem>>, vector<64x128xf32>
      tpu.vector_store %arg8[%c0_11, %c0_12], %13 {strides = array<i32>} : memref<64x128xf32, #tpu.memory_space<vmem>>, vector<64x128xf32>,
    } else {
    }
    %c0 = arith.constant 0 : index
    %c0_1 = arith.constant 0 : index
    %3 = vector.load %arg2[%c0, %c0_1] : memref<64x128xi8, #tpu.memory_space<vmem>>, vector<64x128xi8>
    %4 = arith.sitofp %3 : vector<64x128xi8> to vector<64x128xbf16>
    %c0_2 = arith.constant 0 : index
    %c0_3 = arith.constant 0 : index
    %5 = vector.load %arg8[%c0_2, %c0_3] : memref<64x128xf32, #tpu.memory_space<vmem>>, vector<64x128xf32>
    %c0_4 = arith.constant 0 : index
    %c0_5 = arith.constant 0 : index
    %6 = vector.load %arg3[%c0_4, %c0_5] : memref<128x128xbf16, #tpu.memory_space<vmem>>, vector<128x128xbf16>
    %cst = arith.constant dense<0.000000e+00> : vector<64x128xf32>
    %7 = tpu.matmul %4, %6, %cst {dimension_numbers = #tpu.dot_dimension_numbers<[1], [0], [0], [1], [0, 0, 1, 1], [], []>} : vector<64x128xbf16>, vector<128x128xbf16>, vector<64x128xf32> -> vector<64x128xf32>
    %8 = arith.addf %5, %7 : vector<64x128xf32>
    %c0_6 = arith.constant 0 : index
    %c0_7 = arith.constant 0 : index
    %9 = vector.load %arg8[%c0_6, %c0_7] : memref<64x128xf32, #tpu.memory_space<vmem>>, vector<64x128xf32>
    tpu.vector_store %arg8[%c0_6, %c0_7], %8 {strides = array<i32>} : memref<64x128xf32, #tpu.memory_space<vmem>>, vector<64x128xf32>,
    %c0_i32_8 = arith.constant 0 : i32
    %10 = arith.cmpi eq, %arg1, %c0_i32_8 : i32
    %11 = arith.extui %10 : i1 to i32
    %c0_i32_9 = arith.constant 0 : i32
    %12 = arith.cmpi ne, %11, %c0_i32_9 : i32
    scf.if %12 {
      %c0_10 = arith.constant 0 : index
      %c0_11 = arith.constant 0 : index
      %13 = vector.load %arg8[%c0_10, %c0_11] : memref<64x128xf32, #tpu.memory_space<vmem>>, vector<64x128xf32>
      %c0_12 = arith.constant 0 : index
      %c0_13 = arith.constant 0 : index
      %14 = vector.load %arg4[%c0_12, %c0_13] : memref<64x128xf32, #tpu.memory_space<vmem>>, vector<64x128xf32>
      %15 = arith.addf %13, %14 : vector<64x128xf32>
      %cst_14 = arith.constant 0.000000e+00 : f32
      %16 = vector.broadcast %cst_14 : f32 to vector<64x128xf32>
      %17 = arith.maximumf %15, %16 : vector<64x128xf32>
      %18 = arith.truncf %17 : vector<64x128xf32> to vector<64x128xbf16>
      %c0_15 = arith.constant 0 : index
      %c0_16 = arith.constant 0 : index
      %19 = vector.load %arg5[%c0_15, %c0_16] : memref<128x128xbf16, #tpu.memory_space<vmem>>, vector<128x128xbf16>
      %cst_17 = arith.constant dense<0.000000e+00> : vector<64x128xf32>
      %20 = tpu.matmul %18, %19, %cst_17 {dimension_numbers = #tpu.dot_dimension_numbers<[1], [0], [0], [1], [0, 0, 1, 1], [], []>} : vector<64x128xbf16>, vector<128x128xbf16>, vector<64x128xf32> -> vector<64x128xf32>
      %c0_18 = arith.constant 0 : index
      %c0_19 = arith.constant 0 : index
      %21 = vector.load %arg6[%c0_18, %c0_19] : memref<1x128xf32, #tpu.memory_space<vmem>>, vector<1x128xf32>
      %22 = vector.broadcast %21 : vector<1x128xf32> to vector<64x128xf32>
      %23 = arith.addf %20, %22 : vector<64x128xf32>
      %c0_20 = arith.constant 0 : index
      %c0_21 = arith.constant 0 : index
      %24 = vector.load %arg7[%c0_20, %c0_21] : memref<64x128xf32, #tpu.memory_space<vmem>>, vector<64x128xf32>
      tpu.vector_store %arg7[%c0_20, %c0_21], %23 {strides = array<i32>} : memref<64x128xf32, #tpu.memory_space<vmem>>, vector<64x128xf32>,
    } else {
    }
    return
  }
  func.func @transform_0(%arg0: i32, %arg1: i32) -> (i32, i32) {
    %c0_i32 = arith.constant 0 : i32
    return %arg0, %arg1 : i32, i32
  }
  func.func @transform_1(%arg0: i32, %arg1: i32) -> (i32, i32) {
    %c0_i32 = arith.constant 0 : i32
    %c0_i32_0 = arith.constant 0 : i32
    return %arg1, %c0_i32 : i32, i32
  }
  func.func @transform_2(%arg0: i32, %arg1: i32) -> (i32, i32) {
    %c0_i32 = arith.constant 0 : i32
    %c0_i32_0 = arith.constant 0 : i32
    return %arg0, %c0_i32 : i32, i32
  }
  func.func @transform_3(%arg0: i32, %arg1: i32) -> (i32, i32) {
    %c0_i32 = arith.constant 0 : i32
    %c0_i32_0 = arith.constant 0 : i32
    %c0_i32_1 = arith.constant 0 : i32
    return %c0_i32, %c0_i32_0 : i32, i32
  }
  func.func @transform_4(%arg0: i32, %arg1: i32) -> (i32, i32) {
    %c0_i32 = arith.constant 0 : i32
    %c0_i32_0 = arith.constant 0 : i32
    %c0_i32_1 = arith.constant 0 : i32
    return %c0_i32, %c0_i32_0 : i32, i32
  }
  func.func @transform_5(%arg0: i32, %arg1: i32) -> (i32, i32) {
    %c0_i32 = arith.constant 0 : i32
    %c0_i32_0 = arith.constant 0 : i32
    return %arg0, %c0_i32 : i32, i32
  }
}

</mosaic_0001>

<bundles_post_ra>
// kernel: tpu_custom_call.1
= control target key start
LH: loop header
LB: loop body
LE: loop exit
PB: predicated region body
PF: predicated region fallthrough
CT: control target
= control target key end

     0   :  { %s1627_s0 = inlined_call_operand.hbm [shape: s8[128,128], index: 0, kind: input, shape index: {}]   ;;  %s1628_s1 = inlined_call_operand.hbm [shape: bf16[128,128], index: 1, kind: input, shape index: {}]   ;;  %s1629_s2 = inlined_call_operand.hbm [shape: f32[128,128], index: 2, kind: input, shape index: {}]   ;;  %s1630_s3 = inlined_call_operand.hbm [shape: bf16[128,128], index: 3, kind: input, shape index: {}]   ;;  %s1631_s4 = inlined_call_operand.vmem [shape: f32[1,128], index: 4, kind: input, shape index: {}]   ;;  %s1632_s5 = inlined_call_operand.hbm [shape: f32[128,128], index: 5, kind: output, shape index: {}]  }
   0x1   :  { %1647 = sst [smem:[#allocation20_spill]] %s1627_s0 }
   0x2   :  { %1648 = sst [smem:[#allocation21_spill]] %s1628_s1 }
   0x3   :  { %10 = vsyncpa [#allocation4], 0 }
   0x4   :  { %12 = vsyncpa [#allocation4 + $0x1], 0 }
   0x5   :  { %13 = vsyncpa [#allocation7], 0 }
   0x6   :  { %14 = vsyncpa [#allocation5], 0 }
   0x7   :  { %16 = vsyncpa [#allocation5 + $0x1], 0  ;;  %s1307_s18 = smov 0   ;;  %s1309_s19 = smov 0  }
   0x8   :  { %s1311_s20 = smov 0   ;;  %s1313_s21 = smov 0  }
   0x9   :  { %s1315_s22 = smov 0   ;;  %s1317_s23 = smov 0  }
   0xa LB: > { %1649 = sst [smem:[#allocation16_spill]] %s1264_s23  ;;  %s1338_s24 = sadd.s32 4294967295, %s1264_s23   ;;  %s1264_s23 = sphi %s1317_s23, %s22_s23   ;;  %s1260_s22 = sphi %s1315_s22, %s1687_s22   ;;  %s1256_s21 = sphi %s1313_s21, %s1686_s21   ;;  %s1252_s20 = sphi %s1311_s20, %s1685_s20   ;;  %s1248_s19 = sphi %s1309_s19, %s1684_s19   ;;  %s1244_s18 = sphi %s1307_s18, %s1683_s18  }
   0xb   : > { %s830_s25 = sadd.s32 4294967294, %s1264_s23   ;;  %p56_p0 = scmp.ne.s32.totalorder %s1248_s19, %s1244_s18 }
   0xc   : > { %p1633_p1 = scmp.eq.s32.totalorder %s1338_s24, 0  ;;  %p180_p3 = scmp.eq.s32.totalorder %s830_s25, 1 }
   0xd   : > { %p831_p5 = scmp.ge.s32.totalorder %s1264_s23, 1  ;;  %p187_p7 = scmp.lt.s32.totalorder %s1264_s23, 3 }
   0xe   : > { %p1347_p4 = por %p1633_p1, %p56_p0  ;;  %p1352_p6 = por %p180_p3, %p56_p0 }
   0xf   : > { %p1357_p8 = pnand %p831_p5, %p187_p7  ;;  %s1266_s29 = smov [#allocation6]  }
  0x10   : > { %s1650_s26 = scalar_select %p1347_p4, 1, 0 }
  0x11   : > { %s1651_s27 = scalar_select %p1352_p6, 1, 0 }
  0x12   : > { %s1653_s28 = scalar_select %p1357_p8, 1, 0 }
  0x13   : > { %1652 = sst [smem:[#allocation17_spill]] %s1651_s27  ;;  %s202_s30 = sshll.u32 %s1266_s29, 4  ;;  %s203_s30 = int_to_ptr.vmem [resolvable:$true] %s202_s30 }
  0x14   : > { %p958_p9 = pneg %p1357_p8  ;;  %s34_s7 = sadd.s32 1, %s1260_s22 }
  0x15   : > { %s1655_s1 = sld [smem:[#allocation21_spill]] }
  0x16   : > { %p1366_p11 = pnand %p958_p9, %p1633_p1 }
  0x18   : > { %p1638_p13 = pneg %p1366_p11 }
  0x1b   : > { %s1054_s10 = scalar_lea.hbm %s1655_s1, 1024 }
  0x1c   : > { %p1055_p12 = scmp.ne.s32.totalorder %s1655_s1, %s1054_s10  ;;  %p1061_p5 = scmp.lt.u32.totalorder %s1054_s10, %s1655_s1 }
  0x1e   : > { %p1057_p0 = pnand %p1638_p13, %p1055_p12 }
  0x20   : > { %p1058_p3 = pneg %p1057_p0 }
  0x22   : > { %p1063_p7 = pnand %p1061_p5, %p1058_p3 }
  0x24   : > { %1066 = shalt.err (!%p1063_p7)
}
  0x25   : > { %s1067_s15 = scalar_lea.vmem %s203_s30, 1024  ;;  %p1075_p2 = scmp.lt.s32.totalorder %s203_s30, %s203_s30 }
  0x26   : > { %p1068_p9 = scmp.ne.s32.totalorder %s203_s30, %s1067_s15  ;;  %p1076_p6 = scmp.lt.s32.totalorder %s1067_s15, %s1067_s15 }
  0x28   : > { %p1070_p10 = pnand %p1068_p9, %p1638_p13  ;;  %p1077_p4 = por %p1076_p6, %p1075_p2 }
  0x2a   : > { %p1071_p1 = pneg %p1070_p10 }
  0x2c   : > { %p1078_p8 = pnand %p1077_p4, %p1071_p1 }
  0x2e   : > { %1081 = shalt.err (!%p1078_p8)
}
  0x2f   : > { %s1636_s16 = smov 64   ;;  %s1637_s17 = smov 4  }
  0x30   : > { %961 = dma.hbm_to_vmem [thread:$0]  (!%p1366_p11), %s1655_s1, 1024, %s203_s30, [#allocation7], %s1636_s16, %s1636_s16, %s1637_s17  }
  0x31   : > { %p36_p1 = scmp.ge.s32.totalorder %s34_s7, 2  ;;  %s43_s8 = sadd.s32 1, %s1252_s20 }
  0x32   : > { %p50_p2 = scmp.ne.s32.totalorder %s1252_s20, %s1248_s19  ;;  %p51_p4 = scmp.eq.s32.totalorder %s1264_s23, 0 }
  0x33   : > { %s1689_s7 = smov (%p36_p1, %s34_s7), 0  ;;  %p1658_p8 = scmp.eq.s32.totalorder %s1338_s24, 1 }
  0x34   : > { %1656 = sst [smem:[#allocation18_spill]] %s1689_s7  ;;  %p1402_p6 = por %p51_p4, %p50_p2 }
  0x35   : > { %p1408_p10 = por %p1658_p8, %p50_p2  ;;  %s38_s11 = ssub.s32 %s1260_s22, %s1689_s7 }
  0x36   : > { %p978_p12 = scmp.lt.s32.totalorder %s1264_s23, 2  ;;  %p41_p0 = scmp.eq.s32.totalorder %s38_s11, 0 }
  0x37   : > { %s1659_s10 = scalar_select %p1408_p10, 1, 0 }
  0x38   : > { %s232_s30 = sand.u32 1, %s1264_s23   ;;  %s234_s12 = sand.u32 1, %s1252_s20  }
  0x39   : > { %s1418_s13 = scalar_select %p41_p0, %s1252_s20, %s43_s8  }
  0x3a   : > { %s835_s14 = sshll.u32 %s234_s12, 4  ;;  %s869_s15 = sshll.u32 %s1260_s22, 8 }
  0x3b   : > { %1660 = sst [smem:[#allocation19_spill]] %s1418_s13  ;;  %s1661_s0 = sld [smem:[#allocation20_spill]] }
  0x3c   : > { %s236_s17 = scalar_lea.vmem [#allocation3], %s835_s14  ;;  %p1430_p3 = pnand %p978_p12, %p1402_p6 }
  0x3d   : > { %s244_s1 = sshll.u32 %s236_s17, 4  ;;  %s1436_s8 = scalar_lea.sflag [#allocation4], %s232_s30  ;;  %s1434_s1 = int_to_ptr.vmem [resolvable:$true] %s244_s1 }
  0x3e   : > { %s1662_s11 = scalar_select %p1430_p3, 1, 0 }
  0x3f   : > { %p1644_p7 = pneg %p1430_p3 }
  0x41   : > { %s1426_s16 = scalar_lea.hbm %s1661_s0, %s869_s15  ;;  %s1087_s14 = scalar_lea.hbm %s1661_s0, 512 }
  0x42   : > { %s1082_s25 = scalar_lea.hbm %s1426_s16, 256  ;;  %p1088_p2 = scmp.lt.u32.totalorder %s1426_s16, %s1661_s0 }
  0x43   : > { %p1083_p5 = scmp.ne.s32.totalorder %s1426_s16, %s1082_s25  ;;  %p1089_p4 = scmp.lt.u32.totalorder %s1087_s14, %s1082_s25 }
  0x44   : > { %p1091_p8 = scmp.lt.u32.totalorder %s1082_s25, %s1426_s16 }
  0x45   : > { %p1085_p9 = pnand %p1644_p7, %p1083_p5  ;;  %p1090_p6 = por %p1089_p4, %p1088_p2 }
  0x47   : > { %p1086_p1 = pneg %p1085_p9  ;;  %p1092_p12 = por %p1091_p8, %p1090_p6 }
  0x49   : > { %p1093_p0 = pnand %p1092_p12, %p1086_p1 }
  0x4b   : > { %1096 = shalt.err (!%p1093_p0)
}
  0x4c   : > { %s1097_s30 = scalar_lea.vmem %s1434_s1, 256  ;;  %s1269_s17 = smov [#allocation3]  }
  0x4d   : > { %p1098_p5 = scmp.ne.s32.totalorder %s1434_s1, %s1097_s30  ;;  %s1102_s9 = sshll.u32 %s1269_s17, 4  ;;  %s1103_s9 = int_to_ptr.vmem [resolvable:$false] %s1102_s9 }
  0x4e   : > { %s1104_s15 = scalar_lea.vmem %s1103_s9, 512  ;;  %p1105_p10 = scmp.lt.s32.totalorder %s1434_s1, %s1103_s9 }
  0x4f   : > { %p1100_p9 = pnand %p1098_p5, %p1644_p7  ;;  %p1106_p2 = scmp.lt.s32.totalorder %s1104_s15, %s1097_s30 }
  0x51   : > { %p1101_p13 = pneg %p1100_p9  ;;  %p1107_p4 = por %p1106_p2, %p1105_p10 }
  0x53   : > { %p1108_p6 = pnand %p1107_p4, %p1101_p13 }
  0x55   : > { %1111 = shalt.err (!%p1108_p6)
}
  0x56   : > { %s1270_s25 = smov 128   ;;  %s1271_s14 = smov 8  }
  0x57   : > { %968 = dma.hbm_to_vmem [thread:$0]  (!%p1430_p3), %s1426_s16, 256, %s1434_s1, %s1436_s8, %s1270_s25, %s1270_s25, %s1271_s14  }
  0x58   : > { %s838_s29 = sshll.u32 %s234_s12, 6  ;;  %s1272_s17 = smov [#allocation9]  }
  0x59   : > { %s215_s30 = sshll.u32 %s1272_s17, 4  ;;  %s258_s9 = scalar_lea.vmem [#allocation8], %s838_s29  ;;  %s216_s30 = int_to_ptr.vmem [resolvable:$true] %s215_s30 }
  0x5a   : > { %s265_s15 = sshll.u32 %s258_s9, 4  ;;  %s1112_s13 = scalar_lea.hbm %s1630_s3, 1024  ;;  %s1493_s15 = int_to_ptr.vmem [resolvable:$true] %s265_s15 }
  0x5b   : > { %p1113_p13 = scmp.ne.s32.totalorder %s1630_s3, %s1112_s13  ;;  %p1663_p10 = pneg %p1366_p11 }
  0x5c   : > { %p1119_p12 = scmp.lt.u32.totalorder %s1112_s13, %s1630_s3 }
  0x5d   : > { %p1115_p1 = pnand %p1113_p13, %p1663_p10 }
  0x5f   : > { %p1116_p8 = pneg %p1115_p1 }
  0x61   : > { %p1121_p0 = pnand %p1119_p12, %p1116_p8 }
  0x63   : > { %1124 = shalt.err (!%p1121_p0)
}
  0x64   : > { %s1125_s12 = scalar_lea.vmem %s216_s30, 1024  ;;  %p1664_p9 = pmov %p1663_p10 }
  0x65   : > { %p1126_p5 = scmp.ne.s32.totalorder %s216_s30, %s1125_s12  ;;  %p1133_p6 = scmp.lt.s32.totalorder %s216_s30, %s216_s30 }
  0x66   : > { %p1134_p7 = scmp.lt.s32.totalorder %s1125_s12, %s1125_s12 }
  0x67   : > { %p1128_p2 = pnand %p1126_p5, %p1664_p9 }
  0x68   : > { %p1135_p3 = por %p1134_p7, %p1133_p6 }
  0x69   : > { %p1129_p4 = pneg %p1128_p2 }
  0x6b   : > { %p1136_p10 = pnand %p1135_p3, %p1129_p4 }
  0x6d   : > { %1139 = shalt.err (!%p1136_p10)
}
  0x6e   : > { %s1665_s0 = smov 4   ;;  %s1666_s23 = smov 64  }
  0x6f   : > { %964 = dma.hbm_to_vmem [thread:$0]  (!%p1366_p11), %s1630_s3, 1024, %s216_s30, [#allocation7], %s1666_s23, %s1666_s23, %s1665_s0  }
  0x70   : > { %s870_s13 = sshll.u32 %s1260_s22, 10  ;;  %p1667_p7 = scmp.ne.s32.totalorder %s1662_s11, 0 }
  0x71   : > { %s1498_s9 = scalar_lea.hbm %s1629_s2, %s870_s13  ;;  %s1145_s16 = scalar_lea.hbm %s1629_s2, 2048 }
  0x72   : > { %s1140_s6 = scalar_lea.hbm %s1498_s9, 1024  ;;  %p1668_p13 = pneg %p1667_p7 }
  0x73   : > { %p1141_p3 = scmp.ne.s32.totalorder %s1498_s9, %s1140_s6  ;;  %p1146_p11 = scmp.lt.u32.totalorder %s1498_s9, %s1629_s2 }
  0x74   : > { %p1147_p12 = scmp.lt.u32.totalorder %s1145_s16, %s1140_s6  ;;  %p1149_p5 = scmp.lt.u32.totalorder %s1140_s6, %s1498_s9 }
  0x75   : > { %p1143_p1 = pnand %p1141_p3, %p1668_p13 }
  0x76   : > { %p1148_p0 = por %p1147_p12, %p1146_p11 }
  0x77   : > { %p1144_p8 = pneg %p1143_p1 }
  0x78   : > { %p1150_p9 = por %p1149_p5, %p1148_p0 }
  0x7a   : > { %p1151_p2 = pnand %p1150_p9, %p1144_p8 }
  0x7c   : > { %1154 = shalt.err (!%p1151_p2)
}
  0x7d   : > { %s1155_s23 = scalar_lea.vmem %s1493_s15, 1024  ;;  %p1669_p6 = pmov %p1668_p13 }
  0x7e   : > { %p1156_p4 = scmp.ne.s32.totalorder %s1493_s15, %s1155_s23  ;;  %s1273_s27 = smov [#allocation8]  }
  0x7f   : > { %s1160_s7 = sshll.u32 %s1273_s27, 4  ;;  %s1161_s7 = int_to_ptr.vmem [resolvable:$false] %s1160_s7 }
  0x80   : > { %p1158_p10 = pnand %p1156_p4, %p1669_p6  ;;  %s1162_s13 = scalar_lea.vmem %s1161_s7, 2048 }
  0x81   : > { %p1163_p13 = scmp.lt.s32.totalorder %s1493_s15, %s1161_s7  ;;  %p1164_p1 = scmp.lt.s32.totalorder %s1162_s13, %s1155_s23 }
  0x82   : > { %p1159_p3 = pneg %p1158_p10 }
  0x83   : > { %p1165_p11 = por %p1164_p1, %p1163_p13 }
  0x85   : > { %p1166_p12 = pnand %p1165_p11, %p1159_p3 }
  0x87   : > { %1169 = shalt.err (!%p1166_p12)
}
  0x88   : > { %971 = dma.hbm_to_vmem [thread:$0]  (!%p1667_p7), %s1498_s9, 1024, %s1493_s15, %s1436_s8, %s1270_s25, %s1270_s25, %s1271_s14  }
  0x89   : > { %p1670_p8 = scmp.ne.s32.totalorder %s1653_s28, 0 }
  0x8a   : > { %s279_s29 = sand.u32 (!%p1670_p8), 1, %s1338_s24   ;;  %s1531_s17 = sand.u32 (!%p1670_p8), 1, %s1248_s19  }
  0x8b   : > { %277 = sbr.rel (%p1670_p8) target bundleno = 651 (0x28b), region = 40  ;;  %s842_s6 = sshll.u32 (!%p1670_p8), %s1531_s17, 4 }
  0x8c   : > { %s280_s1 = scalar_lea.sflag (!%p1670_p8), [#allocation4], %s279_s29  ;;  %s1534_s11 = scalar_lea.vmem (!%p1670_p8), [#allocation3], %s842_s6 }
  0x8d   : > { %p1671_p0 = scmp.ne.s32.totalorder (!%p1670_p8), %s1650_s26, 0 }
  0x92   : > { %1223 = dma.done.wait (%p1671_p0), %s280_s1, 256  }
  0x93   : > { %1225 = vsyncadd (%p1671_p0), %s280_s1, 4294967040  ;;  %p1672_p7 = scmp.eq.s32.totalorder %s1338_s24, 0 }
  0x95   : > { %1227 = dma.done.wait (%p1672_p7), [#allocation7], 1024   ;;  %p1673_p5 = pmov %p1672_p7 }
  0x96   : > { %s844_s28 = sshll.u32 %s1531_s17, 6 }
  0x97   : > { %1229 = vsyncadd (%p1673_p5), [#allocation7], 4294966272  ;;  %s1547_s8 = scalar_lea.vmem [#allocation8], %s844_s28 }
  0x98   : > { %1231 = dma.done.wait (%p1671_p0), %s280_s1, 1024  }
  0x99   : > { %1233 = vsyncadd (%p1671_p0), %s280_s1, 4294966272  ;;  %p1674_p9 = pmov %p1673_p5 }
  0x9a   : > { %p1675_p2 = pmov %p1673_p5 }
  0x9b   : > { %1235 = dma.done.wait (%p1674_p9), [#allocation7], 1024  }
  0x9c   : > { %1237 = vsyncadd (%p1675_p2), [#allocation7], 4294966272  ;;  %v1038_v0 = vld [vmem:[#allocation6] sm:$0xff]   ;;  %v1039_v1 = vld [vmem:[#allocation6 + $0x8] sm:$0xff]   ;;  %s331_s25 = scalar_lea.vmem [#allocation10], %s844_s28  ;;  %s871_s15 = sshll.u32 %s1256_s21, 10 }
  0x9d   : > { %896 = vmatprep.subr.bf16.mxu0 %v1038_v0  ;;  %v1040_v2 = vld [vmem:[#allocation6 + $0x10] sm:$0xff]   ;;  %v1041_v3 = vld [vmem:[#allocation6 + $0x18] sm:$0xff]   ;;  %v1046_v6 = vld [vmem:[#allocation9] sm:$0xff]   ;;  %s705_s14 = sshll.u32 %s331_s25, 4  ;;  %s1578_s16 = scalar_lea.hbm %s1632_s5, %s871_s15  ;;  %s1573_s14 = int_to_ptr.vmem [resolvable:$true] %s705_s14 }
  0x9e   : > { %897 = vmatpush3.bf16.msra.mxu0 %v1038_v0  ;;  %v349_v4 = vld [vmem:[%s1534_s11] sm:$0xff]  ;;  %v1047_v7 = vld [vmem:[#allocation9 + $0x8] sm:$0xff]   ;;  %920 = vmatprep.subr.bf16.mxu1 %v1046_v6  ;;  %v1049_v11 = vld [vmem:[#allocation9 + $0x18] sm:$0xff]   ;;  %s692_s21 = scalar_lea.sflag [#allocation5], %s1531_s17  ;;  %s1170_s12 = scalar_lea.vmem %s1573_s14, 1024 }
  0x9f   : > { %898 = vmatprep.subr.bf16.mxu0 %v1039_v1  ;;  %v351_v5 = vunpack.c.l.s8.bf16 %v349_v4  ;;  %v1042_v8 = vld [vmem:[#allocation6 + $0x20] sm:$0xff]   ;;  %921 = vmatpush3.bf16.msra.mxu1 %v1046_v6  ;;  %v1048_v9 = vld [vmem:[#allocation9 + $0x10] sm:$0xff]   ;;  %v1043_v10 = vld [vmem:[#allocation6 + $0x28] sm:$0xff]   ;;  %v352_v17 = vunpack.c.h.s8.bf16 %v349_v4  ;;  %p1171_p4 = scmp.ne.s32.totalorder %s1573_s14, %s1170_s12  ;;  %p1676_p6 = scmp.ne.s32.totalorder %s1659_s10, 0 }
  0xa0   : > { %922 = vmatprep.subr.bf16.mxu1 %v1047_v7  ;;  %v1044_v12 = vld [vmem:[#allocation6 + $0x30] sm:$0xff]   ;;  %v1050_v13 = vld [vmem:[#allocation9 + $0x20] sm:$0xff]   ;;  %v1045_v14 = vld [vmem:[#allocation6 + $0x38] sm:$0xff]   ;;  %s1274_s0 = smov [#allocation10]  }
  0xa1   : > { %912 = vmatprep.mubr.bf16.mxu0 %v351_v5  ;;  %v1051_v15 = vld [vmem:[#allocation9 + $0x28] sm:$0xff]   ;;  %v1052_v20 = vld [vmem:[#allocation9 + $0x30] sm:$0xff]   ;;  %v1053_v21 = vld [vmem:[#allocation9 + $0x38] sm:$0xff]   ;;  %p1172_p10 = pnand %p1171_p4, %p1676_p6  ;;  %s1174_s23 = sshll.u32 %s1274_s0, 4  ;;  %s1175_s23 = int_to_ptr.vmem [resolvable:$false] %s1174_s23 }
  0xa2   : > { %899 = vmatpush3.bf16.msra.mxu0 %v1039_v1  ;;  %v350_v16 = vld [vmem:[%s1534_s11 + $0x8] sm:$0xff]  ;;  %v521_v22 = vld [vmem:[%s1547_s8 + $0x10] sm:$0xff]  ;;  %v519_v23 = vld [vmem:[%s1547_s8] sm:$0xff]  ;;  %s1176_s27 = scalar_lea.vmem %s1175_s23, 2048  ;;  %p1177_p13 = scmp.lt.s32.totalorder %s1573_s14, %s1175_s23 }
  0xa3   : > { %900 = vmatprep.subr.bf16.mxu0 %v1040_v2  ;;  %923 = vmatpush3.bf16.msra.mxu1 %v1047_v7  ;;  %v353_v18 = vunpack.c.l.s8.bf16 %v350_v16  ;;  %v354_v19 = vunpack.c.h.s8.bf16 %v350_v16  ;;  %v522_v25 = vld [vmem:[%s1547_s8 + $0x18] sm:$0xff]  ;;  %v520_v28 = vld [vmem:[%s1547_s8 + $0x8] sm:$0xff]  ;;  %v525_v38 = vld [vmem:[%s1547_s8 + $0x30] sm:$0xff]  ;;  %p1173_p3 = pneg %p1172_p10  ;;  %p1178_p1 = scmp.lt.s32.totalorder %s1176_s27, %s1170_s12 }
  0xa4   : > { %924 = vmatprep.subr.bf16.mxu1 %v1048_v9  ;;  %v523_v40 = vld [vmem:[%s1547_s8 + $0x20] sm:$0xff]  ;;  %v526_v42 = vld [vmem:[%s1547_s8 + $0x38] sm:$0xff]  ;;  %v524_v46 = vld [vmem:[%s1547_s8 + $0x28] sm:$0xff] }
  0xa5   : > { %v855_v58 = vld [vmem:[%s1631_s4] ss:$0 sm:$0xff]  ;;  %p1179_p11 = por %p1178_p1, %p1177_p13 }
  0xa6   : > { %901 = vmatpush3.bf16.msra.mxu0 %v1040_v2 }
  0xa7   : > { %902 = vmatprep.subr.bf16.mxu0 %v1041_v3  ;;  %925 = vmatpush3.bf16.msra.mxu1 %v1048_v9  ;;  %p1180_p12 = pnand %p1179_p11, %p1173_p3 }
  0xa8   : > { %926 = vmatprep.subr.bf16.mxu1 %v1049_v11 }
  0xaa   : > { %903 = vmatpush3.bf16.msra.mxu0 %v1041_v3 }
  0xab   : > { %904 = vmatprep.subr.bf16.mxu0 %v1042_v8  ;;  %927 = vmatpush3.bf16.msra.mxu1 %v1049_v11 }
  0xac   : > { %928 = vmatprep.subr.bf16.mxu1 %v1050_v13 }
  0xae   : > { %905 = vmatpush3.bf16.msra.mxu0 %v1042_v8 }
  0xaf   : > { %906 = vmatprep.subr.bf16.mxu0 %v1043_v10  ;;  %929 = vmatpush3.bf16.msra.mxu1 %v1050_v13 }
  0xb0   : > { %930 = vmatprep.subr.bf16.mxu1 %v1051_v15 }
  0xb2   : > { %907 = vmatpush3.bf16.msra.mxu0 %v1043_v10 }
  0xb3   : > { %908 = vmatprep.subr.bf16.mxu0 %v1044_v12  ;;  %931 = vmatpush3.bf16.msra.mxu1 %v1051_v15 }
  0xb4   : > { %932 = vmatprep.subr.bf16.mxu1 %v1052_v20 }
  0xb6   : > { %909 = vmatpush3.bf16.msra.mxu0 %v1044_v12 }
  0xb7   : > { %910 = vmatprep.subr.bf16.mxu0 %v1045_v14  ;;  %933 = vmatpush3.bf16.msra.mxu1 %v1052_v20 }
  0xb8   : > { %934 = vmatprep.subr.bf16.mxu1 %v1053_v21 }
  0xba   : > { %911 = vmatpush3.bf16.msra.mxu0 %v1045_v14 }
  0xbb   : > { %935 = vmatpush3.bf16.msra.mxu1 %v1053_v21 }
  0xbd   : > { %913 = vmatmul.mubr.bf16.vlgmr.msra.gmra.mrb[0].mxu0 %v352_v17 }
  0xbe   : > { %916 = vmatprep.mubr.bf16.mxu0 %v353_v18 }
  0xc5   : > { %917 = vmatmul.mubr.bf16.gmra.mrb[4].mxu0 %v354_v19 }
 0x190   : > { %v914_v24 = vpop.f32.mrb[0].mxu0 }
 0x191   : > { %v529_v26 = vadd.f32 %v914_v24, %v521_v22  ;;  %v461_v27 = vpop.f32.mrb[1].mxu0 }
 0x192   : > { %v527_v29 = vadd.f32 %v519_v23, %v461_v27  ;;  %v915_v30 = vpop.f32.mrb[2].mxu0 }
 0x193   : > { %v530_v31 = vadd.f32 %v915_v30, %v522_v25  ;;  %v464_v32 = vpop.f32.mrb[3].mxu0  ;;  %v537_v34 = vmax.f32 %v529_v26, 0.0 }
 0x194   : > { %v528_v33 = vadd.f32 %v520_v28, %v464_v32  ;;  %v535_v36 = vmax.f32 %v527_v29, 0.0 }
 0x195   : > { %v538_v35 = vmax.f32 %v530_v31, 0.0 }
 0x196   : > { %v536_v37 = vmax.f32 %v528_v33, 0.0 }
 0x197   : > { %v544_v39 = vpack.c.bf16 %v538_v35, %v537_v34 }
 0x198   : > { %v918_v41 = vpop.f32.mrb[4].mxu0  ;;  %v543_v43 = vpack.c.bf16 %v536_v37, %v535_v36 }
 0x199   : > { %v533_v44 = vadd.f32 %v918_v41, %v525_v38  ;;  %v477_v45 = vpop.f32.mrb[5].mxu0 }
 0x19a   : > { %v531_v47 = vadd.f32 %v523_v40, %v477_v45  ;;  %v919_v48 = vpop.f32.mrb[6].mxu0  ;;  %936 = vmatprep.mubr.bf16.mxu1 %v543_v43 }
 0x19b   : > { %v534_v49 = vadd.f32 %v919_v48, %v526_v42  ;;  %v480_v50 = vpop.f32.mrb[7].mxu0  ;;  %937 = vmatmul.mubr.bf16.vlgmr.msra.gmra.mrb[0].mxu1 %v544_v39  ;;  %v541_v52 = vmax.f32 %v533_v44, 0.0 }
 0x19c   : > { %v532_v51 = vadd.f32 %v524_v46, %v480_v50  ;;  %v539_v54 = vmax.f32 %v531_v47, 0.0 }
 0x19d   : > { %v542_v53 = vmax.f32 %v534_v49, 0.0 }
 0x19e   : > { %v540_v55 = vmax.f32 %v532_v51, 0.0 }
 0x19f   : > { %v546_v56 = vpack.c.bf16 %v542_v53, %v541_v52 }
 0x1a0   : > { %v545_v57 = vpack.c.bf16 %v540_v55, %v539_v54 }
 0x1a2   : > { %940 = vmatprep.mubr.bf16.mxu1 %v545_v57 }
 0x1a3   : > { %941 = vmatmul.mubr.bf16.gmra.mrb[4].mxu1 %v546_v56 }
 0x26e   : > { %v938_v59 = vpop.f32.mrb[0].mxu1 }
 0x26f   : > { %v661_v60 = vadd.f32 %v938_v59, %v855_v58  ;;  %v652_v61 = vpop.f32.mrb[1].mxu1 }
 0x270   : > { %v653_v62 = vadd.f32 %v855_v58, %v652_v61  ;;  %v939_v63 = vpop.f32.mrb[2].mxu1 }
 0x271   : > { %685 = vst [vmem:[%s331_s25 + $0x10] sm:$0xff] %v661_v60  ;;  %v664_v0 = vadd.f32 %v939_v63, %v855_v58  ;;  %v655_v1 = vpop.f32.mrb[3].mxu1 }
 0x272   : > { %683 = vst [vmem:[%s331_s25] sm:$0xff] %v653_v62  ;;  %v656_v2 = vadd.f32 %v855_v58, %v655_v1 }
 0x273   : > { %686 = vst [vmem:[%s331_s25 + $0x18] sm:$0xff] %v664_v0 }
 0x274   : > { %684 = vst [vmem:[%s331_s25 + $0x8] sm:$0xff] %v656_v2 }
 0x276   : > { %v942_v3 = vpop.f32.mrb[4].mxu1 }
 0x277   : > { %v677_v4 = vadd.f32 %v942_v3, %v855_v58  ;;  %v668_v5 = vpop.f32.mrb[5].mxu1 }
 0x278   : > { %v669_v6 = vadd.f32 %v855_v58, %v668_v5  ;;  %v943_v7 = vpop.f32.mrb[6].mxu1 }
 0x279   : > { %689 = vst [vmem:[%s331_s25 + $0x30] sm:$0xff] %v677_v4  ;;  %v680_v8 = vadd.f32 %v943_v7, %v855_v58  ;;  %v671_v9 = vpop.f32.mrb[7].mxu1 }
 0x27a   : > { %687 = vst [vmem:[%s331_s25 + $0x20] sm:$0xff] %v669_v6  ;;  %v672_v10 = vadd.f32 %v855_v58, %v671_v9 }
 0x27b   : > { %690 = vst [vmem:[%s331_s25 + $0x38] sm:$0xff] %v680_v8 }
 0x27c   : > { %688 = vst [vmem:[%s331_s25 + $0x28] sm:$0xff] %v672_v10 }
 0x27d   : > { %1183 = shalt.err (!%p1180_p12)
}
 0x27e   : > { %s1184_s7 = scalar_lea.hbm %s1578_s16, 1024  ;;  %s1188_s6 = scalar_lea.hbm %s1632_s5, 2048 }
 0x27f   : > { %p1185_p8 = scmp.ne.s32.totalorder %s1578_s16, %s1184_s7  ;;  %p1189_p5 = scmp.lt.u32.totalorder %s1578_s16, %s1632_s5 }
 0x280   : > { %p1190_p9 = scmp.lt.u32.totalorder %s1188_s6, %s1184_s7  ;;  %p1192_p4 = scmp.lt.u32.totalorder %s1184_s7, %s1578_s16 }
 0x281   : > { %p1186_p0 = pnand %p1185_p8, %p1676_p6 }
 0x282   : > { %p1191_p2 = por %p1190_p9, %p1189_p5 }
 0x283   : > { %p1187_p7 = pneg %p1186_p0 }
 0x284   : > { %p1193_p10 = por %p1192_p4, %p1191_p2 }
 0x286   : > { %p1194_p3 = pnand %p1193_p10, %p1187_p7 }
 0x288   : > { %1197 = shalt.err (!%p1194_p3)
}
 0x289   : > { %s1275_s28 = smov 128   ;;  %s1276_s8 = smov 8  }
 0x28a   : > { %956 = dma.vmem_to_hbm [thread:$0]  (%p1676_p6), %s1573_s14, 1024, %s1578_s16, %s692_s21, %s1275_s28, %s1275_s28, %s1276_s8  }
 0x28b PF: > { %s1677_s24 = sld [smem:[#allocation17_spill]]  ;;  %s1678_s26 = sld [smem:[#allocation16_spill]] }
 0x28c   : > { %s720_s25 = sand.u32 1, %s1244_s18  }
 0x28d   : > { %s721_s15 = scalar_lea.sflag [#allocation5], %s720_s25 }
 0x291   : > { %p1679_p13 = scmp.ne.s32.totalorder %s1677_s24, 0  ;;  %p1680_p1 = scmp.ge.s32.totalorder %s1678_s26, 2 }
 0x293   : > { %p973_p11 = pnand %p1680_p1, %p1679_p13 }
 0x295   : > { %1239 = dma.done.wait (!%p973_p11), %s721_s15, 1024  }
 0x296   : > { %1241 = vsyncadd (!%p973_p11), %s721_s15, 4294966272  ;;  %s22_s23 = sadd.s32 1, %s1678_s26   ;;  %s1681_s9 = sld [smem:[#allocation19_spill]] }
 0x297   : > { %p19_p12 = scmp.ge.s32.totalorder %s22_s23, 4   ;;  %s1682_s10 = sld [smem:[#allocation18_spill]] }
 0x298   : > { %s1683_s18 = smov %s1248_s19  ;;  %s1684_s19 = smov %s1252_s20 }
 0x299   : > { %s1686_s21 = smov %s1260_s22  ;;  %21 = sbr.rel (!%p19_p12) target bundleno = 10 (0xa), region = 113 }
 0x29c   : > { %s1685_s20 = smov %s1681_s9 }
 0x29d   : > { %s1687_s22 = smov %s1682_s10 }
 0x2a0   :  { %726 = vsyncpa [#allocation4], 1 }
 0x2a1   :  { %728 = vsyncpa [#allocation4 + $0x1], 1 }
 0x2a2   :  { %729 = vsyncpa [#allocation7], 1 }
 0x2a3   :  { %730 = vsyncpa [#allocation5], 1 }
 0x2a4   :  { %732 = vsyncpa [#allocation5 + $0x1], 1 }

</bundles_post_ra>
